<compile_context>
chip_gen: v7x
topology: tpu7x:2x2x1
jax: 0.10.0
libtpu: 0.0.40
codegen_flags: <defaults>
</compile_context>

<pallas_src>
import functools

import numpy as np
import jax
import jax.numpy as jnp
from jax.experimental import pallas as pl
from jax.experimental.pallas import tpu as pltpu


def _round_up(a, m):
    return ((a + m - 1) // m) * m


def channel_attention_kernel(x_ref, w1t_ref, w2t_ref, out_ref, sum_sc, max_sc,
                             *, hw, need_mask):
    # x_ref  : (TB, C, HW_CHUNK) native dtype — one batch tile x one spatial chunk
    # w1t_ref: (C, hidden) f32,  w2t_ref: (hidden, C) f32 — VMEM-resident weights
    # out_ref: (TB, C)          — sigmoid(channel attention), written at the last HW chunk
    # sum_sc / max_sc: (TB, C) f32 running pooled sum / running max scratch
    k = pl.program_id(1)
    n_k = pl.num_programs(1)
    hw_chunk = x_ref.shape[2]

    xb = x_ref[...]                                   # single VMEM read feeds both pools

    if need_mask:
        # Last HW chunk overhangs H*W: mask padded lanes (sum -> 0, max -> -inf).
        lane = jax.lax.broadcasted_iota(jnp.int32, xb.shape, 2)
        valid = lane < (hw - k * hw_chunk)
        x_for_sum = jnp.where(valid, xb, jnp.zeros_like(xb))
        x_for_max = jnp.where(valid, xb, jnp.full_like(xb, -jnp.inf))
    else:
        x_for_sum = xb
        x_for_max = xb

    part_sum = jnp.sum(x_for_sum, axis=2, dtype=jnp.float32)   # f32 accumulation over lanes
    part_max = jnp.max(x_for_max, axis=2).astype(jnp.float32)

    @pl.when(k == 0)
    def _():
        sum_sc[...] = part_sum
        max_sc[...] = part_max

    @pl.when(k > 0)
    def _():
        sum_sc[...] = sum_sc[...] + part_sum
        max_sc[...] = jnp.maximum(max_sc[...], part_max)

    @pl.when(k == n_k - 1)
    def _():
        avg = sum_sc[...] * jnp.float32(1.0 / hw)
        mx = max_sc[...]
        pooled = jnp.concatenate([avg, mx], axis=0)             # (2*TB, C): one shared-MLP pass
        hid = jax.nn.relu(jnp.dot(pooled, w1t_ref[...],
                                  preferred_element_type=jnp.float32))
        logits = jnp.dot(hid, w2t_ref[...], preferred_element_type=jnp.float32)
        tb = avg.shape[0]
        out_ref[...] = jax.nn.sigmoid(logits[:tb] + logits[tb:]).astype(out_ref.dtype)


def channel_attention_pallas(x, w1, w2, *, target_block_bytes=8 << 20,
                             vmem_limit_bytes=None):
    """x: (B, C, H, W); w1: (C//16, C, 1, 1); w2: (C, C//16, 1, 1). Returns (B, C, 1, 1)."""
    b, c, h, w = x.shape
    hw = h * w
    hidden = w1.shape[0]
    assert w1.shape == (hidden, c, 1, 1) and w2.shape == (c, hidden, 1, 1)

    dsize = jnp.dtype(x.dtype).itemsize
    xf = x.reshape(b, c, hw)                                    # native dtype, no f32 copy
    w1t = jnp.transpose(w1[:, :, 0, 0]).astype(jnp.float32)     # (C, hidden)
    w2t = jnp.transpose(w2[:, :, 0, 0]).astype(jnp.float32)     # (hidden, C)

    # ---- HW chunking (lane axis): multiple of 128, or the full extent if it fits. ----
    row_bytes = c * dsize
    full_lane_bytes = c * _round_up(hw, 128) * dsize            # lane-padded footprint
    if full_lane_bytes <= target_block_bytes:
        hw_chunk = hw
    else:
        lanes = max(128, (target_block_bytes // row_bytes) // 128 * 128)
        hw_chunk = min(_round_up(hw, 128), lanes)
        if hw_chunk >= hw:
            hw_chunk = hw
    n_hw = -(-hw // hw_chunk)
    need_mask = (hw % hw_chunk) != 0

    # ---- Batch tiling against the (lane-padded, double-buffered) VMEM budget. ----
    per_sample = c * _round_up(hw_chunk, 128) * dsize
    tb = min(b, max(1, target_block_bytes // per_sample))
    if tb != b:
        tb = (tb // 8) * 8                                      # (TB, C) output block rule
        if tb <= 0:
            tb = b if b < 8 else 8
    # v7x megacore: keep >= 2 steps on the "parallel" batch axis when a single
    # full-batch step would otherwise carry all the work.
    if tb == b and n_hw == 1 and b >= 16 and (b // 2) % 8 == 0:
        tb = b // 2
    grid = (-(-b // tb), n_hw)

    x_block_bytes = tb * per_sample
    if vmem_limit_bytes is None:
        # x block is double-buffered; weights / output / scratch are comparatively tiny.
        vmem_limit_bytes = int(min(64 << 20, max(32 << 20, 4 * x_block_bytes)))

    cost = pl.CostEstimate(
        flops=int(b * (2 * c * hw + 8 * c * hidden)),
        transcendentals=int(b * c),
        bytes_accessed=int(b * c * hw * dsize + b * c * dsize + 8 * c * hidden),
    )

    kernel = functools.partial(channel_attention_kernel, hw=hw, need_mask=need_mask)

    out = pl.pallas_call(
        kernel,
        out_shape=jax.ShapeDtypeStruct((b, c), x.dtype),
        grid=grid,
        in_specs=[
            pl.BlockSpec((tb, c, hw_chunk), lambda i, k: (i, 0, k)),  # activations
            pl.BlockSpec((c, hidden), lambda i, k: (0, 0)),           # fc[0] weight (resident)
            pl.BlockSpec((hidden, c), lambda i, k: (0, 0)),           # fc[2] weight (resident)
        ],
        out_specs=pl.BlockSpec((tb, c), lambda i, k: (i, 0)),
        scratch_shapes=[
            pltpu.VMEM((tb, c), jnp.float32),                         # running pooled sum
            pltpu.VMEM((tb, c), jnp.float32),                         # running max
        ],
        compiler_params=pltpu.CompilerParams(
            dimension_semantics=("parallel", "arbitrary"),
            vmem_limit_bytes=vmem_limit_bytes,
        ),
        cost_estimate=cost,
    )(xf, w1t, w2t)
    return out.reshape(b, c, 1, 1)


def channel_attention_reference(x, w1, w2):
    """Pure-JAX mirror of the PyTorch forward pass (for verification)."""
    b, c, h, w = x.shape
    xf = x.astype(jnp.float32)
    avg = xf.mean(axis=(2, 3))                                  # (B, C)
    mx = xf.max(axis=(2, 3))                                    # (B, C)
    W1 = w1[:, :, 0, 0].astype(jnp.float32)                     # (hidden, C)
    W2 = w2[:, :, 0, 0].astype(jnp.float32)                     # (C, hidden)

    def fc(v):
        return jax.nn.relu(v @ W1.T) @ W2.T

    return jax.nn.sigmoid(fc(avg) + fc(mx)).reshape(b, c, 1, 1).astype(x.dtype)


if __name__ == "__main__":
    # Module hard-codes in_planes // 16 for the bottleneck, so pick C divisible by 16.

    # Case 1: main small shape (single HW chunk, whole tile resident).
    b, c, h, w = 2, 32, 16, 16
    hidden = c // 16                                            # = 2
    k = jax.random.split(jax.random.PRNGKey(0), 3)
    x = jax.random.normal(k[0], (b, c, h, w), jnp.float32)
    w1 = 0.3 * jax.random.normal(k[1], (hidden, c, 1, 1), jnp.float32)
    w2 = 0.3 * jax.random.normal(k[2], (c, hidden, 1, 1), jnp.float32)

    out = jax.block_until_ready(channel_attention_pallas(x, w1, w2))
    ref = channel_attention_reference(x, w1, w2)
    np.testing.assert_allclose(np.asarray(out), np.asarray(ref), rtol=1e-4, atol=1e-4)

    # Case 2: force the chunked-HW path (masked ragged tail, multi-step reduction with
    # VMEM scratch accumulation) by shrinking the per-block VMEM budget.
    b2, c2, h2, w2s = 4, 16, 24, 24                             # H*W = 576 -> 3 x 256-lane chunks
    hidden2 = c2 // 16                                          # = 1
    k2 = jax.random.split(jax.random.PRNGKey(1), 3)
    x2 = jax.random.normal(k2[0], (b2, c2, h2, w2s), jnp.float32)
    w1b = 0.3 * jax.random.normal(k2[1], (hidden2, c2, 1, 1), jnp.float32)
    w2b = 0.3 * jax.random.normal(k2[2], (c2, hidden2, 1, 1), jnp.float32)

    out2 = jax.block_until_ready(
        channel_attention_pallas(x2, w1b, w2b, target_block_bytes=16 << 10))
    ref2 = channel_attention_reference(x2, w1b, w2b)
    np.testing.assert_allclose(np.asarray(out2), np.asarray(ref2), rtol=1e-4, atol=1e-4)

    print("KERNEL_OK")
</pallas_src>

<mosaic_0001>
module attributes {stable_mosaic.version = 11 : i64} {
  func.func @channel_attention_kernel(%arg0: i32, %arg1: i32, %arg2: memref<2x32x256xf32, #tpu.memory_space<vmem>>, %arg3: memref<32x2xf32, #tpu.memory_space<vmem>>, %arg4: memref<2x32xf32, #tpu.memory_space<vmem>>, %arg5: memref<2x32xf32, #tpu.memory_space<vmem>>, %arg6: memref<2x32xf32, #tpu.memory_space<vmem>>, %arg7: memref<2x32xf32, #tpu.memory_space<vmem>>) attributes {dimension_semantics = [#tpu.dimension_semantics<parallel>, #tpu.dimension_semantics<arbitrary>], iteration_bounds = array<i64: 1, 1>, scalar_prefetch = 0 : i64, scratch_operands = 2 : i64, tpu.core_type = #tpu.core_type<tc>, window_params = [{transform_indices = @transform_0, window_bounds = array<i64: 2, 32, 256>}, {pipeline_mode = #tpu.pipeline_mode<synchronous>, transform_indices = @transform_1, window_bounds = array<i64: 32, 2>}, {pipeline_mode = #tpu.pipeline_mode<synchronous>, transform_indices = @transform_2, window_bounds = array<i64: 2, 32>}, {transform_indices = @transform_3, window_bounds = array<i64: 2, 32>}]} {
    %c0 = arith.constant 0 : index
    %c0_0 = arith.constant 0 : index
    %c0_1 = arith.constant 0 : index
    %0 = vector.load %arg2[%c0, %c0_0, %c0_1] : memref<2x32x256xf32, #tpu.memory_space<vmem>>, vector<2x32x256xf32>
    %cst = arith.constant dense<0.000000e+00> : vector<2x32xf32>
    %1 = vector.multi_reduction <add>, %0, %cst [2] : vector<2x32x256xf32> to vector<2x32xf32>
    %cst_2 = arith.constant dense<0xFF800000> : vector<2x32xf32>
    %2 = vector.multi_reduction <maximumf>, %0, %cst_2 [2] : vector<2x32x256xf32> to vector<2x32xf32>
    %c0_i32 = arith.constant 0 : i32
    %3 = arith.cmpi eq, %arg1, %c0_i32 : i32
    %4 = arith.extui %3 : i1 to i32
    %c0_i32_3 = arith.constant 0 : i32
    %5 = arith.cmpi ne, %4, %c0_i32_3 : i32
    scf.if %5 {
      %c0_8 = arith.constant 0 : index
      %c0_9 = arith.constant 0 : index
      %12 = vector.load %arg6[%c0_8, %c0_9] : memref<2x32xf32, #tpu.memory_space<vmem>>, vector<2x32xf32>
      tpu.vector_store %arg6[%c0_8, %c0_9], %1 {strides = array<i32>} : memref<2x32xf32, #tpu.memory_space<vmem>>, vector<2x32xf32>,
      %c0_10 = arith.constant 0 : index
      %c0_11 = arith.constant 0 : index
      %13 = vector.load %arg7[%c0_10, %c0_11] : memref<2x32xf32, #tpu.memory_space<vmem>>, vector<2x32xf32>
      tpu.vector_store %arg7[%c0_10, %c0_11], %2 {strides = array<i32>} : memref<2x32xf32, #tpu.memory_space<vmem>>, vector<2x32xf32>,
    } else {
    }
    %c0_i32_4 = arith.constant 0 : i32
    %6 = arith.cmpi sgt, %arg1, %c0_i32_4 : i32
    %7 = arith.extui %6 : i1 to i32
    %c0_i32_5 = arith.constant 0 : i32
    %8 = arith.cmpi ne, %7, %c0_i32_5 : i32
    scf.if %8 {
      %c0_8 = arith.constant 0 : index
      %c0_9 = arith.constant 0 : index
      %12 = vector.load %arg6[%c0_8, %c0_9] : memref<2x32xf32, #tpu.memory_space<vmem>>, vector<2x32xf32>
      %13 = arith.addf %12, %1 : vector<2x32xf32>
      %c0_10 = arith.constant 0 : index
      %c0_11 = arith.constant 0 : index
      %14 = vector.load %arg6[%c0_10, %c0_11] : memref<2x32xf32, #tpu.memory_space<vmem>>, vector<2x32xf32>
      tpu.vector_store %arg6[%c0_10, %c0_11], %13 {strides = array<i32>} : memref<2x32xf32, #tpu.memory_space<vmem>>, vector<2x32xf32>,
      %c0_12 = arith.constant 0 : index
      %c0_13 = arith.constant 0 : index
      %15 = vector.load %arg7[%c0_12, %c0_13] : memref<2x32xf32, #tpu.memory_space<vmem>>, vector<2x32xf32>
      %16 = arith.maximumf %15, %2 : vector<2x32xf32>
      %c0_14 = arith.constant 0 : index
      %c0_15 = arith.constant 0 : index
      %17 = vector.load %arg7[%c0_14, %c0_15] : memref<2x32xf32, #tpu.memory_space<vmem>>, vector<2x32xf32>
      tpu.vector_store %arg7[%c0_14, %c0_15], %16 {strides = array<i32>} : memref<2x32xf32, #tpu.memory_space<vmem>>, vector<2x32xf32>,
    } else {
    }
    %c0_i32_6 = arith.constant 0 : i32
    %9 = arith.cmpi eq, %arg1, %c0_i32_6 : i32
    %10 = arith.extui %9 : i1 to i32
    %c0_i32_7 = arith.constant 0 : i32
    %11 = arith.cmpi ne, %10, %c0_i32_7 : i32
    scf.if %11 {
      %c0_8 = arith.constant 0 : index
      %c0_9 = arith.constant 0 : index
      %12 = vector.load %arg6[%c0_8, %c0_9] : memref<2x32xf32, #tpu.memory_space<vmem>>, vector<2x32xf32>
      %cst_10 = arith.constant 3.906250e-03 : f32
      %13 = vector.broadcast %cst_10 : f32 to vector<2x32xf32>
      %14 = arith.mulf %12, %13 : vector<2x32xf32>
      %c0_11 = arith.constant 0 : index
      %c0_12 = arith.constant 0 : index
      %15 = vector.load %arg7[%c0_11, %c0_12] : memref<2x32xf32, #tpu.memory_space<vmem>>, vector<2x32xf32>
      %16 = tpu.concatenate %14, %15 in 0 : vector<2x32xf32>, vector<2x32xf32> -> vector<4x32xf32>
      %c0_13 = arith.constant 0 : index
      %c0_14 = arith.constant 0 : index
      %17 = vector.load %arg3[%c0_13, %c0_14] : memref<32x2xf32, #tpu.memory_space<vmem>>, vector<32x2xf32>
      %cst_15 = arith.constant dense<0.000000e+00> : vector<4x2xf32>
      %18 = tpu.matmul %16, %17, %cst_15 {dimension_numbers = #tpu.dot_dimension_numbers<[1], [0], [0], [1], [0, 0, 1, 1], [], []>} : vector<4x32xf32>, vector<32x2xf32>, vector<4x2xf32> -> vector<4x2xf32>
      %cst_16 = arith.constant 0.000000e+00 : f32
      %19 = vector.broadcast %cst_16 : f32 to vector<4x2xf32>
      %20 = arith.maximumf %18, %19 : vector<4x2xf32>
      %c0_17 = arith.constant 0 : index
      %c0_18 = arith.constant 0 : index
      %21 = vector.load %arg4[%c0_17, %c0_18] : memref<2x32xf32, #tpu.memory_space<vmem>>, vector<2x32xf32>
      %cst_19 = arith.constant dense<0.000000e+00> : vector<4x32xf32>
      %22 = tpu.matmul %20, %21, %cst_19 {dimension_numbers = #tpu.dot_dimension_numbers<[1], [0], [0], [1], [0, 0, 1, 1], [], []>} : vector<4x2xf32>, vector<2x32xf32>, vector<4x32xf32> -> vector<4x32xf32>
      %23 = vector.extract_strided_slice %22 {offsets = [0, 0], sizes = [2, 32], strides = [1, 1]} : vector<4x32xf32> to vector<2x32xf32>
      %24 = vector.extract_strided_slice %22 {offsets = [2, 0], sizes = [2, 32], strides = [1, 1]} : vector<4x32xf32> to vector<2x32xf32>
      %25 = arith.addf %23, %24 : vector<2x32xf32>
      %26 = arith.negf %25 : vector<2x32xf32>
      %27 = math.exp %26 : vector<2x32xf32>
      %cst_20 = arith.constant 1.000000e+00 : f32
      %28 = vector.broadcast %cst_20 : f32 to vector<2x32xf32>
      %29 = arith.addf %28, %27 : vector<2x32xf32>
      %30 = arith.divf %28, %29 : vector<2x32xf32>
      %c0_21 = arith.constant 0 : index
      %c0_22 = arith.constant 0 : index
      %31 = vector.load %arg5[%c0_21, %c0_22] : memref<2x32xf32, #tpu.memory_space<vmem>>, vector<2x32xf32>
      tpu.vector_store %arg5[%c0_21, %c0_22], %30 {strides = array<i32>} : memref<2x32xf32, #tpu.memory_space<vmem>>, vector<2x32xf32>,
    } else {
    }
    return
  }
  func.func @transform_0(%arg0: i32, %arg1: i32) -> (i32, i32, i32) {
    %c0_i32 = arith.constant 0 : i32
    %c0_i32_0 = arith.constant 0 : i32
    return %arg0, %c0_i32, %arg1 : i32, i32, i32
  }
  func.func @transform_1(%arg0: i32, %arg1: i32) -> (i32, i32) {
    %c0_i32 = arith.constant 0 : i32
    %c0_i32_0 = arith.constant 0 : i32
    %c0_i32_1 = arith.constant 0 : i32
    return %c0_i32, %c0_i32_0 : i32, i32
  }
  func.func @transform_2(%arg0: i32, %arg1: i32) -> (i32, i32) {
    %c0_i32 = arith.constant 0 : i32
    %c0_i32_0 = arith.constant 0 : i32
    %c0_i32_1 = arith.constant 0 : i32
    return %c0_i32, %c0_i32_0 : i32, i32
  }
  func.func @transform_3(%arg0: i32, %arg1: i32) -> (i32, i32) {
    %c0_i32 = arith.constant 0 : i32
    %c0_i32_0 = arith.constant 0 : i32
    return %arg0, %c0_i32 : i32, i32
  }
}

</mosaic_0001>

<bundles_post_ra>
// kernel: tpu_custom_call.1
= control target key start
LH: loop header
LB: loop body
LE: loop exit
PB: predicated region body
PF: predicated region fallthrough
CT: control target
= control target key end

     0   :  { %8 = vsyncpa [#allocation5], 0  ;;  %s691_s0 = inlined_call_operand.hbm [shape: f32[2,32,256], index: 0, kind: input, shape index: {}]   ;;  %s692_s1 = inlined_call_operand.vmem [shape: f32[32,2], index: 1, kind: input, shape index: {}]   ;;  %s693_s2 = inlined_call_operand.vmem [shape: f32[2,32], index: 2, kind: input, shape index: {}]   ;;  %s694_s3 = inlined_call_operand.hbm [shape: f32[2,32], index: 3, kind: output, shape index: {}]  }
   0x1   :  { %9 = vsyncpa [#allocation6], 0  ;;  %s608_s12 = smov [#allocation4]   ;;  %s560_s16 = scalar_lea.hbm %s691_s0, 2048 }
   0x2   :  { %s15_s13 = sshll.u32 %s608_s12, 4  ;;  %p561_p0 = scmp.ne.s32.totalorder %s691_s0, %s560_s16  ;;  %s16_s13 = int_to_ptr.vmem [resolvable:$true] %s15_s13 }
   0x3   :  { %p564_p1 = scmp.lt.u32.totalorder %s560_s16, %s691_s0 }
   0x5   :  { %p566_p2 = pnand %p564_p1, %p561_p0 }
   0x7   :  { %569 = shalt.err (!%p566_p2)
}
   0x8   :  { %s570_s21 = scalar_lea.vmem %s16_s13, 2048  ;;  %p575_p4 = scmp.lt.s32.totalorder %s16_s13, %s16_s13 }
   0x9   :  { %p571_p3 = scmp.ne.s32.totalorder %s16_s13, %s570_s21  ;;  %p576_p5 = scmp.lt.s32.totalorder %s570_s21, %s570_s21 }
   0xb   :  { %p577_p6 = por %p576_p5, %p575_p4 }
   0xd   :  { %p578_p7 = pnand %p577_p6, %p571_p3 }
   0xf   :  { %581 = shalt.err (!%p578_p7)
}
  0x10   :  { %s609_s22 = smov 256   ;;  %s610_s23 = smov 16  }
  0x11   :  { %21 = dma.hbm_to_vmem [thread:$0]  %s691_s0, 2048, %s16_s13, [#allocation5], %s609_s22, %s609_s22, %s610_s23  }
  0x12   :  { %604 = dma.done.wait [#allocation5], 2048  }
  0x13   :  { %605 = vsyncadd [#allocation5], 4294965248  ;;  %v37_v0 = vld [vmem:[#allocation4 + $0x40] sm:$0xff]  ;;  %v38_v1 = vld [vmem:[#allocation4 + $0x48] sm:$0xff]  ;;  %v611_v35 = vmov 0.0|0.0   ;;  %vm612_vm0 = vmmov 0   ;;  %v105_v44 = vlaneseq }
  0x14   :  { %v29_v2 = vld [vmem:[#allocation4] sm:$0xff]  ;;  %v57_v3 = vadd.f32 %v38_v1, %v37_v0  ;;  %v30_v4 = vld [vmem:[#allocation4 + $0x8] sm:$0xff]  ;;  %v39_v5 = vld [vmem:[#allocation4 + $0x50] sm:$0xff]  ;;  %v81_v15 = vmax.f32 %v37_v0, %v38_v1  ;;  %543 = vmatprep.subr.bf16.mxu0 %v611_v35  ;;  %v613_v38 = vmov 0.0   ;;  %vm116_vm1 = vcmask 130112   ;;  %s614_s7 = smov [#allocation7]  }
  0x15   :  { %v40_v6 = vld [vmem:[#allocation4 + $0x58] sm:$0xff]  ;;  %v45_v7 = vadd.f32 %v30_v4, %v29_v2  ;;  %v31_v8 = vld [vmem:[#allocation4 + $0x10] sm:$0xff]  ;;  %v69_v13 = vmax.f32 %v29_v2, %v30_v4  ;;  %v41_v16 = vld [vmem:[#allocation4 + $0x60] sm:$0xff]  ;;  %535 = vmatprep.mubr.msk.f32.mxu0 %vm612_vm0, %v613_v38  ;;  %538 = vmatprep.subr.mxu1 %v613_v38  ;;  %v106_v47 = vand.u32 127, %v105_v44  ;;  %v108_v51 = vshrl.u32 %v105_v44, 7  ;;  %s507_s8 = sshll.u32 %s614_s7, 4  ;;  %s508_s8 = int_to_ptr.vmem [resolvable:$true] %s507_s8 }
  0x16   :  { %v32_v9 = vld [vmem:[#allocation4 + $0x18] sm:$0xff]  ;;  %58 = vadd.xlane.f32.xlu1 %v57_v3  ;;  %v60_v10 = vadd.f32 %v40_v6, %v39_v5  ;;  %v84_v14 = vmax.f32 %v39_v5, %v40_v6  ;;  %v42_v17 = vld [vmem:[#allocation4 + $0x68] sm:$0xff]  ;;  %v33_v18 = vld [vmem:[#allocation4 + $0x20] sm:$0xff]  ;;  %540 = vmatprep.mubr.msk.f32.mxu1 %vm612_vm0, %v613_v38  ;;  %vm123_vm2 = vcmask 195712   ;;  %vm130_vm3 = vcmask 261312   ;;  %p587_p9 = scmp.lt.s32.totalorder %s508_s8, %s508_s8 }
  0x17   :  { %46 = vadd.xlane.f32.xlu0 %v45_v7  ;;  %v48_v11 = vadd.f32 %v32_v9, %v31_v8  ;;  %v72_v12 = vmax.f32 %v31_v8, %v32_v9  ;;  %v34_v19 = vld [vmem:[#allocation4 + $0x28] sm:$0xff]  ;;  %v63_v20 = vadd.f32 %v42_v17, %v41_v16  ;;  %v87_v22 = vmax.f32 %v41_v16, %v42_v17  ;;  %v43_v24 = vld [vmem:[#allocation4 + $0x70] sm:$0xff]  ;;  %v44_v25 = vld [vmem:[#allocation4 + $0x78] sm:$0xff] }
  0x18   :  { %v51_v21 = vadd.f32 %v34_v19, %v33_v18  ;;  %v75_v23 = vmax.f32 %v33_v18, %v34_v19  ;;  %v35_v26 = vld [vmem:[#allocation4 + $0x30] sm:$0xff]  ;;  %v36_v27 = vld [vmem:[#allocation4 + $0x38] sm:$0xff]  ;;  %v66_v28 = vadd.f32 %v44_v25, %v43_v24  ;;  %v90_v30 = vmax.f32 %v43_v24, %v44_v25  ;;  %v333_v33 = vld [vmem:[%s692_s1 + $0x8] sm:$0xff] }
  0x19   :  { %v54_v29 = vadd.f32 %v36_v27, %v35_v26  ;;  %v78_v31 = vmax.f32 %v35_v26, %v36_v27  ;;  %v332_v32 = vld [vmem:[%s692_s1] sm:$0xff]  ;;  %v334_v34 = vld [vmem:[%s692_s1 + $0x10] sm:$0xff]  ;;  %v335_v37 = vld [vmem:[%s692_s1 + $0x18] sm:$0xff]  ;;  %v111_v48 = vadd.s32 4294967288, %v106_v47  ;;  %v118_v52 = vadd.s32 4294967280, %v106_v47 }
  0x1a   :  { %61 = vadd.xlane.f32.xlu1 %v60_v10  ;;  %v544_v36 = vpack.c.bf16 %v333_v33, %v332_v32  ;;  %v547_v39 = vpack.c.bf16 %v335_v37, %v334_v34  ;;  %v125_v56 = vadd.s32 4294967272, %v106_v47  ;;  %v109_v57 = vsub.s32 %v106_v47, %v108_v51  ;;  %v411_v37 = vld [vmem:[%s693_s2] sm:$0x3]  ;;  %s582_s2 = scalar_lea.vmem %s508_s8, 32 }
  0x1b   :  { %49 = vadd.xlane.f32.xlu0 %v48_v11  ;;  %v114_v53 = vsub.s32 %v111_v48, %v108_v51  ;;  %v121_v58 = vsub.s32 %v118_v52, %v108_v51  ;;  %vm151_vm4 = vcmask 1041409   ;;  %vm154_vm5 = vcmask 254976   ;;  %p583_p8 = scmp.ne.s32.totalorder %s508_s8, %s582_s2  ;;  %p588_p10 = scmp.lt.s32.totalorder %s582_s2, %s582_s2 }
  0x1c   :  { %545 = vmatpush3.bf16.msra.mxu0 %v544_v36  ;;  %v128_v63 = vsub.s32 %v125_v56, %v108_v51  ;;  %vm330_vm6 = vcmask 1041408   ;;  %vm336_vm7 = vcmask 261120   ;;  %vm412_vm8 = vcmask 15360  }
  0x1d   :  { %546 = vmatprep.subr.bf16.mxu0 %v611_v35  ;;  %539 = vmatpush3.msk.msra.mxu1 %vm330_vm6, %v411_v37  ;;  %p589_p11 = por %p588_p10, %p587_p9 }
  0x1e   :  { %73 = vmax.xlane.f32.xlu1 %v72_v12 }
  0x1f   :  { %70 = vmax.xlane.f32.xlu0 %v69_v13  ;;  %p590_p12 = pnand %p589_p11, %p583_p8 }
  0x20   :  { %548 = vmatpush3.bf16.msra.mxu0 %v547_v39 }
  0x22   :  { %85 = vmax.xlane.f32.xlu1 %v84_v14 }
  0x23   :  { %82 = vmax.xlane.f32.xlu0 %v81_v15 }
  0x26   :  { %64 = vadd.xlane.f32.xlu1 %v63_v20 }
  0x27   :  { %52 = vadd.xlane.f32.xlu0 %v51_v21 }
  0x2a   :  { %88 = vmax.xlane.f32.xlu1 %v87_v22 }
  0x2b   :  { %76 = vmax.xlane.f32.xlu0 %v75_v23 }
  0x2e   :  { %67 = vadd.xlane.f32.xlu1 %v66_v28 }
  0x2f   :  { %55 = vadd.xlane.f32.xlu0 %v54_v29 }
  0x32   :  { %91 = vmax.xlane.f32.xlu1 %v90_v30 }
  0x33   :  { %79 = vmax.xlane.f32.xlu0 %v78_v31 }
  0xa3   :  { %v59_v40 = vpop.xlane.xlu1 %58 }
  0xa4   :  { %v47_v41 = vpop.xlane.xlu0 %46  ;;  %v135_v0 = vrot.slane %v59_v40, %v109_v57 }
  0xa5   :  { %v110_v1 = vrot.slane %v47_v41, %v109_v57 }
  0xa7   :  { %v62_v42 = vpop.xlane.xlu1 %61 }
  0xa8   :  { %v50_v43 = vpop.xlane.xlu0 %49  ;;  %v139_v59 = vrot.slane %v62_v42, %v114_v53 }
  0xa9   :  { %v115_v60 = vrot.slane %v50_v43, %v114_v53 }
  0xaa   :  { %v140_v4 = vsel %vm116_vm1, %v139_v59, %v135_v0 }
  0xab   :  { %v74_v45 = vpop.xlane.xlu1 %73  ;;  %v117_v5 = vsel %vm116_vm1, %v115_v60, %v110_v1 }
  0xac   :  { %v71_v46 = vpop.xlane.xlu0 %70  ;;  %v171_v7 = vrot.slane %v74_v45, %v114_v53 }
  0xad   :  { %v167_v12 = vrot.slane %v71_v46, %v109_v57 }
  0xaf   :  { %v86_v49 = vpop.xlane.xlu1 %85  ;;  %v172_v25 = vsel %vm116_vm1, %v171_v7, %v167_v12 }
  0xb0   :  { %v83_v50 = vpop.xlane.xlu0 %82  ;;  %v190_v8 = vrot.slane %v86_v49, %v114_v53 }
  0xb1   :  { %v186_v9 = vrot.slane %v83_v50, %v109_v57 }
  0xb3   :  { %v65_v54 = vpop.xlane.xlu1 %64  ;;  %v191_v21 = vsel %vm116_vm1, %v190_v8, %v186_v9 }
  0xb4   :  { %v53_v55 = vpop.xlane.xlu0 %52  ;;  %v144_v2 = vrot.slane %v65_v54, %v121_v58 }
  0xb5   :  { %v122_v3 = vrot.slane %v53_v55, %v121_v58 }
  0xb6   :  { %v145_v13 = vsel %vm123_vm2, %v144_v2, %v140_v4 }
  0xb7   :  { %v89_v61 = vpop.xlane.xlu1 %88  ;;  %v124_v16 = vsel %vm123_vm2, %v122_v3, %v117_v5 }
  0xb8   :  { %v77_v62 = vpop.xlane.xlu0 %76  ;;  %v195_v14 = vrot.slane %v89_v61, %v121_v58 }
  0xb9   :  { %v176_v17 = vrot.slane %v77_v62, %v121_v58 }
  0xba   :  { %v196_v26 = vsel %vm123_vm2, %v195_v14, %v191_v21 }
  0xbb   :  { %v68_v6 = vpop.xlane.xlu1 %67  ;;  %v177_v28 = vsel %vm123_vm2, %v176_v17, %v172_v25 }
  0xbc   :  { %v149_v10 = vrot.slane %v68_v6, %v128_v63  ;;  %v56_v11 = vpop.xlane.xlu0 %55 }
  0xbd   :  { %v129_v15 = vrot.slane %v56_v11, %v128_v63 }
  0xbe   :  { %v150_v18 = vsel %vm130_vm3, %v149_v10, %v145_v13 }
  0xbf   :  { %v131_v19 = vsel %vm130_vm3, %v129_v15, %v124_v16  ;;  %v92_v20 = vpop.xlane.xlu1 %91 }
  0xc0   :  { %v152_v22 = vsel %vm151_vm4, %v150_v18, %v131_v19  ;;  %v200_v23 = vrot.slane %v92_v20, %v128_v63  ;;  %v80_v24 = vpop.xlane.xlu0 %79 }
  0xc1   :  { %155 = vst.msk [vmem:[#allocation2] sm:$0x3] %vm154_vm5, %v152_v22  ;;  %v181_v27 = vrot.slane %v80_v24, %v128_v63 }
  0xc2   :  { %v201_v29 = vsel %vm130_vm3, %v200_v23, %v196_v26 }
  0xc3   :  { %v182_v30 = vsel %vm130_vm3, %v181_v27, %v177_v28 }
  0xc4   :  { %v202_v31 = vsel %vm151_vm4, %v201_v29, %v182_v30 }
  0xc5   :  { %204 = vst.msk [vmem:[#allocation3] sm:$0x3] %vm154_vm5, %v202_v31 }
  0xc8   :  { %v324_v32 = vld [vmem:[#allocation2] sm:$0x3] }
  0xc9   :  { %v325_v34 = vmul.f32 0.00390625, %v324_v32 }
  0xcc   :  { %v326_v33 = vld [vmem:[#allocation3] sm:$0x3] }
  0xcd   :  { %v328_v35 = vrot.slane %v326_v33, 6 }
  0xcf   :  { %v331_v36 = vsel %vm330_vm6, %v325_v34, %v328_v35 }
  0xd0   :  { %536 = vmatmul.mubr.msk.f32.vlgmr.msra.gmra.mrb[0].mxu0 %vm336_vm7, %v331_v36 }
 0x1a3   :  { %v406_v38 = vpop.f32.mrb[0].mxu0 }
 0x1a4   :  { %v410_v39 = vmax.f32 %v406_v38, 0.0  ;;  %v537_v40 = vpop.f32.mrb[1].mxu0 }
 0x1a6   :  { %541 = vmatmul.mubr.msk.f32.vlgmr.msra.gmra.mrb[0].mxu1 %vm412_vm8, %v410_v39 }
 0x279   :  { %v485_v41 = vpop.f32.mrb[0].mxu1 }
 0x27a   :  { %v490_v42 = vrot.slane %v485_v41, 2  ;;  %v542_v43 = vpop.f32.mrb[1].mxu1 }
 0x27c   :  { %v492_v44 = vadd.f32 %v490_v42, %v485_v41 }
 0x27e   :  { %v519_v45 = vmul.f32 -1.442695, %v492_v44 }
 0x280   :  { %556 = vpow2.f32 %v519_v45 }
 0x28a   :  { %v557_v46 = vpop.eup %556 }
 0x28b   :  { %v496_v47 = vadd.f32 1.0, %v557_v46 }
 0x28d   :  { %558 = vrcp.f32 %v496_v47 }
 0x297   :  { %v559_v48 = vpop.eup %558 }
 0x298   :  { %500 = vst.msk [vmem:[#allocation7] sm:$0x3] %vm154_vm5, %v559_v48 }
 0x299   :  { %593 = shalt.err (!%p590_p12)
}
 0x29a   :  { %s594_s11 = scalar_lea.hbm %s694_s3, 32 }
 0x29b   :  { %p595_p13 = scmp.ne.s32.totalorder %s694_s3, %s594_s11  ;;  %p598_p0 = scmp.lt.u32.totalorder %s594_s11, %s694_s3 }
 0x29d   :  { %p600_p1 = pnand %p598_p0, %p595_p13 }
 0x29f   :  { %603 = shalt.err (!%p600_p1)
}
 0x2a0   :  { %510 = dma.vmem_to_hbm [thread:$0]  %s508_s8, 32, %s694_s3, [#allocation6]  }
 0x2a1   :  { %606 = dma.done.wait [#allocation6], 32  }
 0x2a2   :  { %607 = vsyncadd [#allocation6], 4294967264 }
 0x2a3   :  { %514 = vsyncpa [#allocation5], 1 }
 0x2a4   :  { %515 = vsyncpa [#allocation6], 1 }

</bundles_post_ra>
